<compile_context>
chip_gen: v5e
topology: v5e:2x2
jax: 0.10.0
libtpu: 0.0.40
codegen_flags: <defaults>
</compile_context>

<pallas_src>
import numpy as np
import jax
import jax.numpy as jnp
from jax.experimental import pallas as pl
from jax.experimental.pallas import tpu as pltpu

_LANE = 128                          # vreg lane width
_MAX_LANE_WIDTH = 32768              # widest lane-dense view to attempt
_TARGET_BLOCK_BYTES = 4 * 1024 * 1024  # ~4 MiB per tile (amortizes per-step overhead)


# ----------------------------------------------------------------------------
# Parameter construction (mirrors ConvNeXtExampleModel.__init__; unused in forward)
# Built with numpy -> no device allocations for weights forward never reads.
# ----------------------------------------------------------------------------
def build_convnext_example_params():
    """Deterministic parameters matching the PyTorch module's shapes (host-side)."""
    params = {}
    # backbone.stages: 4x ConvModule(3, 4, kernel_size=1, bias=True)
    params["stages"] = [
        {
            "weight": np.full((4, 3, 1, 1), 0.01 * (i + 1), np.float32),
            "bias": np.zeros((4,), np.float32),
        }
        for i in range(4)
    ]
    # backbone.downsample_layers: 4x Conv2d(3, 4, kernel_size=1, bias=True)
    params["downsample_layers"] = [
        {
            "weight": np.full((4, 3, 1, 1), 0.02 * (i + 1), np.float32),
            "bias": np.zeros((4,), np.float32),
        }
        for i in range(4)
    ]
    # BatchNorm2d(2) blocks: norm0, downsample_norm0/1/2
    def _bn():
        return {
            "weight": np.ones((2,), np.float32),
            "bias": np.zeros((2,), np.float32),
            "running_mean": np.zeros((2,), np.float32),
            "running_var": np.ones((2,), np.float32),
        }
    for name in ["norm0", "downsample_norm0", "downsample_norm1", "downsample_norm2"]:
        params[name] = _bn()
    # scalar parameters (all initialized to ones, per torch.ones(1))
    for name in ["cls_token", "mask_token", "pos_embed", "stem_norm", "lin"]:
        params[name] = np.ones((1,), np.float32)
    # decode_head: Conv2d(2, 2, kernel_size=1, groups=2) -> weight (2, 1, 1, 1)
    params["decode_head"] = {
        "weight": np.full((2, 1, 1, 1), 0.5, np.float32),
        "bias": np.zeros((2,), np.float32),
    }
    return params


# ----------------------------------------------------------------------------
# Identity copy kernel (forward semantics: return x)
# ----------------------------------------------------------------------------
def _copy_kernel(x_ref, o_ref):
    o_ref[...] = x_ref[...]


def _pick_lane_dense_view(total):
    """Widest cols (multiple of 128, <= _MAX_LANE_WIDTH) that divides `total`."""
    cap = min(total, _MAX_LANE_WIDTH)
    c = cap - (cap % _LANE)
    while c >= _LANE:
        if total % c == 0:
            return c
        c -= _LANE
    return 0  # no lane-dense factorization


def _identity_copy(x):
    orig_shape = x.shape
    total = int(np.prod(orig_shape)) if len(orig_shape) else 1
    itemsize = jnp.dtype(x.dtype).itemsize

    cols = _pick_lane_dense_view(total) if total > 0 else 0
    if cols == 0:
        # Odd-sized tail case: single whole-array block (full-extent exemption);
        # Mosaic pads/masks the (8,128) tile internally. Correct, just the slow path.
        # TODO(synk): a masked multi-tile path would be needed only for huge ragged inputs.
        return pl.pallas_call(
            _copy_kernel,
            out_shape=jax.ShapeDtypeStruct(orig_shape, x.dtype),
        )(x)

    rows = total // cols
    bytes_per_row = cols * itemsize
    target_rows = max(1, _TARGET_BLOCK_BYTES // bytes_per_row)
    if rows <= target_rows:
        block_rows = rows  # single row-block: full extent on the sublane axis
    else:
        block_rows = max(8, (target_rows // 8) * 8)  # multiple of 8 -> unmasked stores

    grid = (pl.cdiv(rows, block_rows),)
    x2d = x.reshape(rows, cols)  # contiguous reshape: free under jit

    out2d = pl.pallas_call(
        _copy_kernel,
        out_shape=jax.ShapeDtypeStruct((rows, cols), x.dtype),
        grid=grid,
        in_specs=[pl.BlockSpec((block_rows, cols), lambda i: (i, 0))],
        out_specs=pl.BlockSpec((block_rows, cols), lambda i: (i, 0)),
        compiler_params=pltpu.CompilerParams(
            dimension_semantics=("parallel",),
            vmem_limit_bytes=32 * 1024 * 1024,
        ),
    )(x2d)
    return out2d.reshape(orig_shape)


@jax.jit
def pseudo_data_parallel_forward(x):
    """PseudoDataParallel.forward(x) = x, as a lane-dense tiled Pallas identity kernel."""
    return _identity_copy(x)


# ----------------------------------------------------------------------------
if __name__ == "__main__":
    # Parameters exist on the module but are never used by forward.
    _params = build_convnext_example_params()

    key = jax.random.PRNGKey(0)
    # NCHW input consistent with the 3-channel 1x1 convs defined by the model.
    x = jax.random.normal(key, (2, 3, 16, 16), dtype=jnp.float32)

    y = pseudo_data_parallel_forward(x)
    y = jax.block_until_ready(y)
    assert y.shape == x.shape and y.dtype == x.dtype
    assert bool(jnp.array_equal(y, x)), "identity forward mismatch"

    # Also exercise the odd-shape fallback path (element count not % 128).
    x_odd = jax.random.normal(jax.random.PRNGKey(1), (2, 3, 5, 7), dtype=jnp.float32)
    y_odd = jax.block_until_ready(pseudo_data_parallel_forward(x_odd))
    assert bool(jnp.array_equal(y_odd, x_odd)), "odd-shape identity mismatch"

    print("KERNEL_OK")
</pallas_src>

<mosaic_0001>
module attributes {stable_mosaic.version = 11 : i64} {
  func.func @_copy_kernel(%arg0: i32, %arg1: memref<1x1536xf32, #tpu.memory_space<vmem>>, %arg2: memref<1x1536xf32, #tpu.memory_space<vmem>>) attributes {dimension_semantics = [#tpu.dimension_semantics<parallel>], iteration_bounds = array<i64: 1>, scalar_prefetch = 0 : i64, scratch_operands = 0 : i64, tpu.core_type = #tpu.core_type<tc>, window_params = [{transform_indices = @transform_0, window_bounds = array<i64: 1, 1536>}, {transform_indices = @transform_1, window_bounds = array<i64: 1, 1536>}]} {
    %c0 = arith.constant 0 : index
    %c0_0 = arith.constant 0 : index
    %0 = vector.load %arg1[%c0, %c0_0] : memref<1x1536xf32, #tpu.memory_space<vmem>>, vector<1x1536xf32>
    %c0_1 = arith.constant 0 : index
    %c0_2 = arith.constant 0 : index
    %1 = vector.load %arg2[%c0_1, %c0_2] : memref<1x1536xf32, #tpu.memory_space<vmem>>, vector<1x1536xf32>
    tpu.vector_store %arg2[%c0_1, %c0_2], %0 {strides = array<i32>} : memref<1x1536xf32, #tpu.memory_space<vmem>>, vector<1x1536xf32>,
    return
  }
  func.func @transform_0(%arg0: i32) -> (i32, i32) {
    %c0_i32 = arith.constant 0 : i32
    %c0_i32_0 = arith.constant 0 : i32
    return %arg0, %c0_i32 : i32, i32
  }
  func.func @transform_1(%arg0: i32) -> (i32, i32) {
    %c0_i32 = arith.constant 0 : i32
    %c0_i32_0 = arith.constant 0 : i32
    return %arg0, %c0_i32 : i32, i32
  }
}

</mosaic_0001>

<bundles_post_ra>
// kernel: pseudo_data_parallel_forward.1
= control target key start
LH: loop header
LB: loop body
LE: loop exit
PB: predicated region body
PF: predicated region fallthrough
CT: control target
= control target key end

     0   :  { %v11_v0 = vlaneseq  ;;  %s42_s0 = inlined_call_operand.vmem [shape: f32[1,1536], index: 0, kind: input, shape index: {}]   ;;  %s43_s1 = inlined_call_operand.vmem [shape: f32[1,1536], index: 1, kind: output, shape index: {}]  }
   0x1   :  { %v8_v1 = vld [vmem:[%s42_s0] sm:$0xff]  ;;  %v9_v2 = vld [vmem:[%s42_s0 + $0x8] sm:$0xf] }
   0x2   :  { %10 = vst [vmem:[%s43_s1] sm:$0xff] %v8_v1  ;;  %vm13_vm0 = vcmp.lt.s32.totalorder %v11_v0, 512 }
   0x3   :  { %15 = vst.msk [vmem:[%s43_s1 + $0x8] sm:$0xf] %vm13_vm0, %v9_v2 }

</bundles_post_ra>
